<compile_context>
chip_gen: v7x
topology: tpu7x:2x2x1
jax: 0.10.0
libtpu: 0.0.40
codegen_flags: <defaults>
</compile_context>

<pallas_src>
import numpy as np
import jax
import jax.numpy as jnp
from jax.experimental import pallas as pl
from jax.experimental.pallas import tpu as pltpu

# config (DefaultConfig surrogate): configuration = [(2, size_2d_unit)] * num_2d_units
NUM_2D_UNITS = 2     # head unit + gaze unit
SIZE_2D_UNIT = 16    # num_feats per unit -> z per unit: (B, 3, 16)


def _redirect_kernel(c_src_ref, c_dst_ref, z_ref, out_ref):
    """One configuration unit per grid step (unit axis squeezed by BlockSpec).

    out = M @ z with M = R(c_dst) @ R(c_src)^T,  R = R_y(angle1) @ R_x(angle0).

    Shapes inside the kernel (native module layout, no wrapper relayout):
      c_src_ref, c_dst_ref : (B, 2)    per-batch (pitch, yaw) in radians
      z_ref, out_ref       : (B, 3, F) per-batch embedding rows on sublane dim
    """
    # Trig once per (u, b): 8 transcendentals per unit, NOT repeated over F.
    cs = jnp.cos(c_src_ref[...])            # (B, 2)
    ss = jnp.sin(c_src_ref[...])
    cd = jnp.cos(c_dst_ref[...])
    sd = jnp.sin(c_dst_ref[...])

    ca0, ca1 = cs[:, 0:1], cs[:, 1:2]       # (B, 1) — broadcast over F lanes
    sa0, sa1 = ss[:, 0:1], ss[:, 1:2]
    cb0, cb1 = cd[:, 0:1], cd[:, 1:2]
    sb0, sb1 = sd[:, 0:1], sd[:, 1:2]

    # R(angle) = R_y(angle1) @ R_x(angle0) has rows (structural zeros omitted):
    #   [  c1,  s1*s0,  s1*c0 ]
    #   [   0,     c0,    -s0 ]
    #   [ -s1,  c1*s0,  c1*c0 ]
    a01 = sa1 * sa0
    a02 = sa1 * ca0
    a21 = ca1 * sa0
    a22 = ca1 * ca0
    b01 = sb1 * sb0
    b02 = sb1 * cb0
    b21 = cb1 * sb0
    b22 = cb1 * cb0

    # M[i][k] = Rb[i] . Ra[k]   (M = Rb @ Ra^T), zero terms skipped.
    m00 = cb1 * ca1 + b01 * a01 + b02 * a02
    m01 = b01 * ca0 - b02 * sa0
    m02 = -cb1 * sa1 + b01 * a21 + b02 * a22
    m10 = cb0 * a01 - sb0 * a02
    m11 = cb0 * ca0 + sb0 * sa0
    m12 = cb0 * a21 - sb0 * a22
    m20 = -sb1 * ca1 + b21 * a01 + b22 * a02
    m21 = b21 * ca0 - b22 * sa0
    m22 = sb1 * sa1 + b21 * a21 + b22 * a22

    # Single pass over the wide data: 9 FMA rows per unit, f32 throughout.
    z0 = z_ref[:, 0, :]                      # (B, F)
    z1 = z_ref[:, 1, :]
    z2 = z_ref[:, 2, :]

    out_ref[:, 0, :] = m00 * z0 + m01 * z1 + m02 * z2
    out_ref[:, 1, :] = m10 * z0 + m11 * z1 + m12 * z2
    out_ref[:, 2, :] = m20 * z0 + m21 * z1 + m22 * z2


def sted_rotate_redirect(c_src, c_dst, z):
    """Apply the STED rotate/redirect per configuration unit.

    c_src, c_dst: (U, B, 2) float32    pseudo labels per unit (pitch, yaw) rad
    z:            (U, B, 3, F) float32 embeddings per unit
    returns:      (U, B, 3, F) float32
    """
    U, B, dof = c_src.shape
    _, _, rows, F = z.shape                  # rows == 3

    return pl.pallas_call(
        _redirect_kernel,
        out_shape=jax.ShapeDtypeStruct((U, B, rows, F), z.dtype),
        grid=(U,),
        in_specs=[
            # compact angles: no jnp.repeat by F, trig done per (u, b) in-kernel
            pl.BlockSpec((None, B, dof), lambda u: (u, 0, 0)),
            pl.BlockSpec((None, B, dof), lambda u: (u, 0, 0)),
            # native (U, B, 3, F) layout: no wrapper transpose/reshape kernels
            pl.BlockSpec((None, B, rows, F), lambda u: (u, 0, 0, 0)),
        ],
        out_specs=pl.BlockSpec((None, B, rows, F), lambda u: (u, 0, 0, 0)),
        compiler_params=pltpu.CompilerParams(
            dimension_semantics=("parallel",)),   # units split across TCs (v7x)
    )(c_src, c_dst, z)


# ----------------------------- pure-JAX reference -----------------------------
def rotation_matrix_2d_ref(pseudo_label, inverse=False):
    cos = jnp.cos(pseudo_label)
    sin = jnp.sin(pseudo_label)
    ones = jnp.ones_like(cos[:, 0])
    zeros = jnp.zeros_like(cos[:, 0])
    m1 = jnp.stack([ones, zeros, zeros,
                    zeros, cos[:, 0], -sin[:, 0],
                    zeros, sin[:, 0], cos[:, 0]], axis=1).reshape(-1, 3, 3)
    m2 = jnp.stack([cos[:, 1], zeros, sin[:, 1],
                    zeros, ones, zeros,
                    -sin[:, 1], zeros, cos[:, 1]], axis=1).reshape(-1, 3, 3)
    m = jnp.matmul(m2, m1)
    if inverse:
        m = jnp.swapaxes(m, 1, 2)
    return m


def rotate_redirect_ref(c_src, c_dst, z):
    outs = []
    for u in range(z.shape[0]):
        ra_inv = rotation_matrix_2d_ref(c_src[u], inverse=True)
        rb = rotation_matrix_2d_ref(c_dst[u], inverse=False)
        outs.append(jnp.matmul(rb, jnp.matmul(ra_inv, z[u])))
    return jnp.stack(outs, axis=0)


if __name__ == "__main__":
    key = jax.random.PRNGKey(0)
    B = 4
    k1, k2, k3 = jax.random.split(key, 3)
    # pseudo labels in radians (same scale the model uses: ±0.1*pi)
    c_a = ((jax.random.uniform(k1, (NUM_2D_UNITS, B, 2)) - 0.5)
           * np.pi * 0.2).astype(jnp.float32)
    c_b = ((jax.random.uniform(k2, (NUM_2D_UNITS, B, 2)) - 0.5)
           * np.pi * 0.2).astype(jnp.float32)
    z_a = jax.random.normal(
        k3, (NUM_2D_UNITS, B, 3, SIZE_2D_UNIT), dtype=jnp.float32)

    out = sted_rotate_redirect(c_a, c_b, z_a)
    out = jax.block_until_ready(out)

    ref = rotate_redirect_ref(c_a, c_b, z_a)
    np.testing.assert_allclose(np.asarray(out), np.asarray(ref),
                               atol=1e-5, rtol=1e-5)
    print("KERNEL_OK")
</pallas_src>

<mosaic_0001>
module attributes {stable_mosaic.version = 11 : i64} {
  func.func @_redirect_kernel(%arg0: i32, %arg1: memref<1x4x2xf32, #tpu.memory_space<vmem>>, %arg2: memref<1x4x2xf32, #tpu.memory_space<vmem>>, %arg3: memref<1x4x3x16xf32, #tpu.memory_space<vmem>>, %arg4: memref<1x4x3x16xf32, #tpu.memory_space<vmem>>) attributes {dimension_semantics = [#tpu.dimension_semantics<parallel>], iteration_bounds = array<i64: 2>, scalar_prefetch = 0 : i64, scratch_operands = 0 : i64, tpu.core_type = #tpu.core_type<tc>, window_params = [{transform_indices = @transform_0, window_bounds = array<i64: 1, 4, 2>}, {transform_indices = @transform_1, window_bounds = array<i64: 1, 4, 2>}, {transform_indices = @transform_2, window_bounds = array<i64: 1, 4, 3, 16>}, {transform_indices = @transform_3, window_bounds = array<i64: 1, 4, 3, 16>}]} {
    %c0 = arith.constant 0 : index
    %c0_0 = arith.constant 0 : index
    %c0_1 = arith.constant 0 : index
    %0 = vector.load %arg1[%c0, %c0_0, %c0_1] : memref<1x4x2xf32, #tpu.memory_space<vmem>>, vector<1x4x2xf32>
    %1 = vector.shape_cast %0 : vector<1x4x2xf32> to vector<4x2xf32>
    %2 = math.cos %1 : vector<4x2xf32>
    %c0_2 = arith.constant 0 : index
    %c0_3 = arith.constant 0 : index
    %c0_4 = arith.constant 0 : index
    %3 = vector.load %arg1[%c0_2, %c0_3, %c0_4] : memref<1x4x2xf32, #tpu.memory_space<vmem>>, vector<1x4x2xf32>
    %4 = vector.shape_cast %3 : vector<1x4x2xf32> to vector<4x2xf32>
    %5 = math.sin %4 : vector<4x2xf32>
    %c0_5 = arith.constant 0 : index
    %c0_6 = arith.constant 0 : index
    %c0_7 = arith.constant 0 : index
    %6 = vector.load %arg2[%c0_5, %c0_6, %c0_7] : memref<1x4x2xf32, #tpu.memory_space<vmem>>, vector<1x4x2xf32>
    %7 = vector.shape_cast %6 : vector<1x4x2xf32> to vector<4x2xf32>
    %8 = math.cos %7 : vector<4x2xf32>
    %c0_8 = arith.constant 0 : index
    %c0_9 = arith.constant 0 : index
    %c0_10 = arith.constant 0 : index
    %9 = vector.load %arg2[%c0_8, %c0_9, %c0_10] : memref<1x4x2xf32, #tpu.memory_space<vmem>>, vector<1x4x2xf32>
    %10 = vector.shape_cast %9 : vector<1x4x2xf32> to vector<4x2xf32>
    %11 = math.sin %10 : vector<4x2xf32>
    %12 = vector.extract_strided_slice %2 {offsets = [0, 0], sizes = [4, 1], strides = [1, 1]} : vector<4x2xf32> to vector<4x1xf32>
    %13 = vector.extract_strided_slice %2 {offsets = [0, 1], sizes = [4, 1], strides = [1, 1]} : vector<4x2xf32> to vector<4x1xf32>
    %14 = vector.extract_strided_slice %5 {offsets = [0, 0], sizes = [4, 1], strides = [1, 1]} : vector<4x2xf32> to vector<4x1xf32>
    %15 = vector.extract_strided_slice %5 {offsets = [0, 1], sizes = [4, 1], strides = [1, 1]} : vector<4x2xf32> to vector<4x1xf32>
    %16 = vector.extract_strided_slice %8 {offsets = [0, 0], sizes = [4, 1], strides = [1, 1]} : vector<4x2xf32> to vector<4x1xf32>
    %17 = vector.extract_strided_slice %8 {offsets = [0, 1], sizes = [4, 1], strides = [1, 1]} : vector<4x2xf32> to vector<4x1xf32>
    %18 = vector.extract_strided_slice %11 {offsets = [0, 0], sizes = [4, 1], strides = [1, 1]} : vector<4x2xf32> to vector<4x1xf32>
    %19 = vector.extract_strided_slice %11 {offsets = [0, 1], sizes = [4, 1], strides = [1, 1]} : vector<4x2xf32> to vector<4x1xf32>
    %20 = arith.mulf %15, %14 : vector<4x1xf32>
    %21 = arith.mulf %15, %12 : vector<4x1xf32>
    %22 = arith.mulf %13, %14 : vector<4x1xf32>
    %23 = arith.mulf %13, %12 : vector<4x1xf32>
    %24 = arith.mulf %19, %18 : vector<4x1xf32>
    %25 = arith.mulf %19, %16 : vector<4x1xf32>
    %26 = arith.mulf %17, %18 : vector<4x1xf32>
    %27 = arith.mulf %17, %16 : vector<4x1xf32>
    %28 = arith.mulf %17, %13 : vector<4x1xf32>
    %29 = arith.mulf %24, %20 : vector<4x1xf32>
    %30 = arith.addf %28, %29 : vector<4x1xf32>
    %31 = arith.mulf %25, %21 : vector<4x1xf32>
    %32 = arith.addf %30, %31 : vector<4x1xf32>
    %33 = arith.mulf %24, %12 : vector<4x1xf32>
    %34 = arith.mulf %25, %14 : vector<4x1xf32>
    %35 = arith.subf %33, %34 : vector<4x1xf32>
    %cst = arith.constant 0.000000e+00 : f32
    %36 = vector.broadcast %cst : f32 to vector<4x1xf32>
    %37 = arith.subf %36, %17 : vector<4x1xf32>
    %38 = arith.mulf %37, %15 : vector<4x1xf32>
    %39 = arith.mulf %24, %22 : vector<4x1xf32>
    %40 = arith.addf %38, %39 : vector<4x1xf32>
    %41 = arith.mulf %25, %23 : vector<4x1xf32>
    %42 = arith.addf %40, %41 : vector<4x1xf32>
    %43 = arith.mulf %16, %20 : vector<4x1xf32>
    %44 = arith.mulf %18, %21 : vector<4x1xf32>
    %45 = arith.subf %43, %44 : vector<4x1xf32>
    %46 = arith.mulf %16, %12 : vector<4x1xf32>
    %47 = arith.mulf %18, %14 : vector<4x1xf32>
    %48 = arith.addf %46, %47 : vector<4x1xf32>
    %49 = arith.mulf %16, %22 : vector<4x1xf32>
    %50 = arith.mulf %18, %23 : vector<4x1xf32>
    %51 = arith.subf %49, %50 : vector<4x1xf32>
    %cst_11 = arith.constant 0.000000e+00 : f32
    %52 = vector.broadcast %cst_11 : f32 to vector<4x1xf32>
    %53 = arith.subf %52, %19 : vector<4x1xf32>
    %54 = arith.mulf %53, %13 : vector<4x1xf32>
    %55 = arith.mulf %26, %20 : vector<4x1xf32>
    %56 = arith.addf %54, %55 : vector<4x1xf32>
    %57 = arith.mulf %27, %21 : vector<4x1xf32>
    %58 = arith.addf %56, %57 : vector<4x1xf32>
    %59 = arith.mulf %26, %12 : vector<4x1xf32>
    %60 = arith.mulf %27, %14 : vector<4x1xf32>
    %61 = arith.subf %59, %60 : vector<4x1xf32>
    %62 = arith.mulf %19, %15 : vector<4x1xf32>
    %63 = arith.mulf %26, %22 : vector<4x1xf32>
    %64 = arith.addf %62, %63 : vector<4x1xf32>
    %65 = arith.mulf %27, %23 : vector<4x1xf32>
    %66 = arith.addf %64, %65 : vector<4x1xf32>
    %c0_12 = arith.constant 0 : index
    %c0_13 = arith.constant 0 : index
    %c0_14 = arith.constant 0 : index
    %c0_15 = arith.constant 0 : index
    %67 = vector.load %arg3[%c0_12, %c0_13, %c0_14, %c0_15] : memref<1x4x3x16xf32, #tpu.memory_space<vmem>>, vector<1x4x1x16xf32>
    %68 = vector.shape_cast %67 : vector<1x4x1x16xf32> to vector<4x16xf32>
    %c0_16 = arith.constant 0 : index
    %c0_17 = arith.constant 0 : index
    %c1 = arith.constant 1 : index
    %c0_18 = arith.constant 0 : index
    %69 = vector.load %arg3[%c0_16, %c0_17, %c1, %c0_18] : memref<1x4x3x16xf32, #tpu.memory_space<vmem>>, vector<1x4x1x16xf32>
    %70 = vector.shape_cast %69 : vector<1x4x1x16xf32> to vector<4x16xf32>
    %c0_19 = arith.constant 0 : index
    %c0_20 = arith.constant 0 : index
    %c2 = arith.constant 2 : index
    %c0_21 = arith.constant 0 : index
    %71 = vector.load %arg3[%c0_19, %c0_20, %c2, %c0_21] : memref<1x4x3x16xf32, #tpu.memory_space<vmem>>, vector<1x4x1x16xf32>
    %72 = vector.shape_cast %71 : vector<1x4x1x16xf32> to vector<4x16xf32>
    %73 = vector.broadcast %32 : vector<4x1xf32> to vector<4x16xf32>
    %74 = arith.mulf %73, %68 : vector<4x16xf32>
    %75 = vector.broadcast %35 : vector<4x1xf32> to vector<4x16xf32>
    %76 = arith.mulf %75, %70 : vector<4x16xf32>
    %77 = arith.addf %74, %76 : vector<4x16xf32>
    %78 = vector.broadcast %42 : vector<4x1xf32> to vector<4x16xf32>
    %79 = arith.mulf %78, %72 : vector<4x16xf32>
    %80 = arith.addf %77, %79 : vector<4x16xf32>
    %c0_22 = arith.constant 0 : index
    %c0_23 = arith.constant 0 : index
    %c0_24 = arith.constant 0 : index
    %c0_25 = arith.constant 0 : index
    %81 = vector.load %arg4[%c0_22, %c0_23, %c0_24, %c0_25] : memref<1x4x3x16xf32, #tpu.memory_space<vmem>>, vector<1x4x1x16xf32>
    %82 = vector.shape_cast %81 : vector<1x4x1x16xf32> to vector<4x16xf32>
    %83 = vector.shape_cast %80 : vector<4x16xf32> to vector<1x4x1x16xf32>
    tpu.vector_store %arg4[%c0_22, %c0_23, %c0_24, %c0_25], %83 {strides = array<i32>} : memref<1x4x3x16xf32, #tpu.memory_space<vmem>>, vector<1x4x1x16xf32>,
    %84 = vector.broadcast %45 : vector<4x1xf32> to vector<4x16xf32>
    %85 = arith.mulf %84, %68 : vector<4x16xf32>
    %86 = vector.broadcast %48 : vector<4x1xf32> to vector<4x16xf32>
    %87 = arith.mulf %86, %70 : vector<4x16xf32>
    %88 = arith.addf %85, %87 : vector<4x16xf32>
    %89 = vector.broadcast %51 : vector<4x1xf32> to vector<4x16xf32>
    %90 = arith.mulf %89, %72 : vector<4x16xf32>
    %91 = arith.addf %88, %90 : vector<4x16xf32>
    %c0_26 = arith.constant 0 : index
    %c0_27 = arith.constant 0 : index
    %c1_28 = arith.constant 1 : index
    %c0_29 = arith.constant 0 : index
    %92 = vector.load %arg4[%c0_26, %c0_27, %c1_28, %c0_29] : memref<1x4x3x16xf32, #tpu.memory_space<vmem>>, vector<1x4x1x16xf32>
    %93 = vector.shape_cast %92 : vector<1x4x1x16xf32> to vector<4x16xf32>
    %94 = vector.shape_cast %91 : vector<4x16xf32> to vector<1x4x1x16xf32>
    tpu.vector_store %arg4[%c0_26, %c0_27, %c1_28, %c0_29], %94 {strides = array<i32>} : memref<1x4x3x16xf32, #tpu.memory_space<vmem>>, vector<1x4x1x16xf32>,
    %95 = vector.broadcast %58 : vector<4x1xf32> to vector<4x16xf32>
    %96 = arith.mulf %95, %68 : vector<4x16xf32>
    %97 = vector.broadcast %61 : vector<4x1xf32> to vector<4x16xf32>
    %98 = arith.mulf %97, %70 : vector<4x16xf32>
    %99 = arith.addf %96, %98 : vector<4x16xf32>
    %100 = vector.broadcast %66 : vector<4x1xf32> to vector<4x16xf32>
    %101 = arith.mulf %100, %72 : vector<4x16xf32>
    %102 = arith.addf %99, %101 : vector<4x16xf32>
    %c0_30 = arith.constant 0 : index
    %c0_31 = arith.constant 0 : index
    %c2_32 = arith.constant 2 : index
    %c0_33 = arith.constant 0 : index
    %103 = vector.load %arg4[%c0_30, %c0_31, %c2_32, %c0_33] : memref<1x4x3x16xf32, #tpu.memory_space<vmem>>, vector<1x4x1x16xf32>
    %104 = vector.shape_cast %103 : vector<1x4x1x16xf32> to vector<4x16xf32>
    %105 = vector.shape_cast %102 : vector<4x16xf32> to vector<1x4x1x16xf32>
    tpu.vector_store %arg4[%c0_30, %c0_31, %c2_32, %c0_33], %105 {strides = array<i32>} : memref<1x4x3x16xf32, #tpu.memory_space<vmem>>, vector<1x4x1x16xf32>,
    return
  }
  func.func @transform_0(%arg0: i32) -> (i32, i32, i32) {
    %c0_i32 = arith.constant 0 : i32
    %c0_i32_0 = arith.constant 0 : i32
    %c0_i32_1 = arith.constant 0 : i32
    return %arg0, %c0_i32, %c0_i32_0 : i32, i32, i32
  }
  func.func @transform_1(%arg0: i32) -> (i32, i32, i32) {
    %c0_i32 = arith.constant 0 : i32
    %c0_i32_0 = arith.constant 0 : i32
    %c0_i32_1 = arith.constant 0 : i32
    return %arg0, %c0_i32, %c0_i32_0 : i32, i32, i32
  }
  func.func @transform_2(%arg0: i32) -> (i32, i32, i32, i32) {
    %c0_i32 = arith.constant 0 : i32
    %c0_i32_0 = arith.constant 0 : i32
    %c0_i32_1 = arith.constant 0 : i32
    %c0_i32_2 = arith.constant 0 : i32
    return %arg0, %c0_i32, %c0_i32_0, %c0_i32_1 : i32, i32, i32, i32
  }
  func.func @transform_3(%arg0: i32) -> (i32, i32, i32, i32) {
    %c0_i32 = arith.constant 0 : i32
    %c0_i32_0 = arith.constant 0 : i32
    %c0_i32_1 = arith.constant 0 : i32
    %c0_i32_2 = arith.constant 0 : i32
    return %arg0, %c0_i32, %c0_i32_0, %c0_i32_1 : i32, i32, i32, i32
  }
}

</mosaic_0001>

<bundles_post_ra>
// kernel: tpu_custom_call.1
= control target key start
LH: loop header
LB: loop body
LE: loop exit
PB: predicated region body
PF: predicated region fallthrough
CT: control target
= control target key end

     0   :  { %s1093_s12 = smov 0   ;;  %s1266_s0 = inlined_call_operand.vmem [shape: f32[2,4,2], index: 0, kind: input, shape index: {}]   ;;  %s1267_s1 = inlined_call_operand.vmem [shape: f32[2,4,2], index: 1, kind: input, shape index: {}]   ;;  %s1268_s2 = inlined_call_operand.vmem [shape: f32[2,4,3,16], index: 2, kind: input, shape index: {}]   ;;  %s1269_s3 = inlined_call_operand.vmem [shape: f32[2,4,3,16], index: 3, kind: output, shape index: {}]  }
   0x1 LB: > { %s983_s13 = sadd.s32 4294967295, %s1060_s12   ;;  %p987_p0 = scmp.ge.s32.totalorder %s1060_s12, 1  ;;  %s1060_s12 = sphi %s1093_s12, %s13_s12  }
   0x2   : > { %p155_p1 = scmp.lt.s32.totalorder %s1060_s12, 3 }
   0x4   : > { %p156_p2 = pnand %p987_p0, %p155_p1 }
   0x5   : > { %p187_p3 = scmp.lt.s32.totalorder (!%p156_p2), %s983_s13, 1  ;;  %v1062_v24 = vmov (!%p156_p2), 683565275   ;;  %v1063_v26 = vmov (!%p156_p2), 2475754826   ;;  %s1068_s21 = smov (!%p156_p2), 1  }
   0x6   : > { %159 = sbr.rel (%p156_p2) target bundleno = 496 (0x1f0), region = 32  ;;  %v1064_v28 = vmov (!%p156_p2), 2131351028   ;;  %v1065_v30 = vmov (!%p156_p2), 2102212464   ;;  %s1071_s22 = smov (!%p156_p2), 127  }
   0x7   : > { %v1066_v32 = vmov (!%p156_p2), 920167782   ;;  %v1067_v40 = vmov (!%p156_p2), 1326507024  }
   0xd   : > { %s1271_s13 = smov (!%p187_p3, %s983_s13), 1 }
   0xe   : > { %s988_s14 = sshll.u32 %s1271_s13, 2  ;;  %s1012_s23 = sshll.u32 %s1271_s13, 4 }
   0xf   : > { %s194_s17 = scalar_lea.vmem %s1267_s1, %s988_s14  ;;  %s190_s20 = scalar_lea.vmem %s1266_s0, %s988_s14 }
  0x10   : > { %v1107_v0 = vld [vmem:[%s194_s17] sm:$0xf]  ;;  %s1204_s26 = scalar_lea.vmem %s1268_s2, %s1012_s23  ;;  %s1237_s29 = scalar_lea.vmem %s1269_s3, %s1012_s23 }
  0x11   : > { %v414_v1 = vand.u32 2147483647, %v1107_v0  ;;  %v417_v2 = vand.u32 2139095040, %v1107_v0  ;;  %v1114_v3 = vld [vmem:[%s190_s20] sm:$0xf]  ;;  %vm416_vm14 = vcmp.lt.s32.totalorder %v1107_v0, 0 }
  0x12   : > { %v206_v4 = vand.u32 2147483647, %v1114_v3  ;;  %v209_v5 = vand.u32 2139095040, %v1114_v3 }
  0x13   : > { %v418_v6 = vshrl.u32 %v417_v2, 23  ;;  %v421_v7 = vand.u32 8388607, %v414_v1  ;;  %vm415_vm15 = vcmp.le.f32.partialorder %v414_v1, 0.7853982 }
  0x14   : > { %v210_v8 = vshrl.u32 %v209_v5, 23  ;;  %v213_v9 = vand.u32 8388607, %v206_v4 }
  0x15   : > { %v1002_v10 = vadd.s32 4294967169, %v418_v6  ;;  %v422_v13 = vor.u32 8388608, %v421_v7 }
  0x16   : > { %v994_v11 = vadd.s32 4294967169, %v210_v8  ;;  %v214_v14 = vor.u32 8388608, %v213_v9 }
  0x17   : > { %v424_v12 = vadd.s32 1, %v1002_v10  ;;  %v1122_v20 = vshll.u32 %v422_v13, 8 }
  0x18   : > { %v216_v15 = vadd.s32 1, %v994_v11  ;;  %v1124_v22 = vshll.u32 %v214_v14, 8 }
  0x19   : > { %vm425_vm0 = vcmp.gt.s32.totalorder %v424_v12, 0 }
  0x1a   : > { %v426_v16 = vsel %vm425_vm0, %v424_v12, 0  ;;  %vm217_vm1 = vcmp.gt.s32.totalorder %v216_v15, 0  ;;  %vm208_vm0 = vcmp.lt.s32.totalorder %v1114_v3, 0 }
  0x1b   : > { %v427_v17 = vshrl.u32 %v426_v16, 5  ;;  %v428_v18 = vand.u32 31, %v426_v16  ;;  %v218_v19 = vsel %vm217_vm1, %v216_v15, 0  ;;  %vm207_vm1 = vcmp.le.f32.partialorder %v206_v4, 0.7853982 }
  0x1c   : > { %v220_v21 = vand.u32 31, %v218_v19  ;;  %v1126_v34 = vshrl.u32 %v218_v19, 5 }
  0x1d   : > { %v429_v23 = vsub.s32 32, %v428_v18  ;;  %v431_v25 = vshll.u32 %v1062_v24, %v428_v18  ;;  %v434_v27 = vshll.u32 %v1063_v26, %v428_v18  ;;  %v437_v29 = vshll.u32 %v1064_v28, %v428_v18 }
  0x1e   : > { %v440_v31 = vshll.u32 %v1065_v30, %v428_v18  ;;  %v443_v33 = vshll.u32 %v1066_v32, %v428_v18  ;;  %vm446_vm2 = vcmp.lt.s32.totalorder %v427_v17, 1  ;;  %vm447_vm3 = vcmp.lt.s32.totalorder %v427_v17, 2 }
  0x1f   : > { %v430_v35 = vshrl.u32 %v1062_v24, %v429_v23  ;;  %v432_v36 = vshrl.u32 %v1063_v26, %v429_v23  ;;  %v435_v37 = vshrl.u32 %v1064_v28, %v429_v23  ;;  %v438_v38 = vshrl.u32 %v1065_v30, %v429_v23 }
  0x20   : > { %v441_v39 = vshrl.u32 %v1066_v32, %v429_v23  ;;  %v444_v41 = vshrl.u32 %v1067_v40, %v429_v23  ;;  %vm449_vm4 = vcmp.lt.s32.totalorder %v427_v17, 4  ;;  %v221_v45 = vsub.s32 32, %v220_v21 }
  0x21   : > { %v433_v42 = vor.u32 %v432_v36, %v431_v25  ;;  %v436_v43 = vor.u32 %v435_v37, %v434_v27  ;;  %v439_v44 = vor.u32 %v438_v38, %v437_v29  ;;  %vm448_vm5 = vcmp.lt.s32.totalorder %v427_v17, 3 }
  0x22   : > { %v442_v46 = vor.u32 %v441_v39, %v440_v31  ;;  %v445_v47 = vor.u32 %v444_v41, %v443_v33  ;;  %v223_v48 = vshll.u32 %v1062_v24, %v220_v21  ;;  %v226_v56 = vshll.u32 %v1063_v26, %v220_v21 }
  0x23   : > { %v450_v49 = vsel %vm446_vm2, %v430_v35, %v433_v42  ;;  %v451_v50 = vsel %vm449_vm4, %v439_v44, 2102212464  ;;  %v454_v51 = vsel %vm446_vm2, %v433_v42, %v436_v43  ;;  %v458_v52 = vsel %vm446_vm2, %v436_v43, %v439_v44 }
  0x24   : > { %v452_v53 = vsel %vm448_vm5, %v436_v43, %v451_v50  ;;  %v455_v54 = vsel %vm449_vm4, %v442_v46, 920167782  ;;  %v459_v55 = vsel %vm449_vm4, %v445_v47, 1326507024  ;;  %v222_v59 = vshrl.u32 %v1062_v24, %v221_v45 }
  0x25   : > { %v456_v57 = vsel %vm448_vm5, %v439_v44, %v455_v54  ;;  %v460_v58 = vsel %vm448_vm5, %v442_v46, %v459_v55  ;;  %v224_v60 = vshrl.u32 %v1063_v26, %v221_v45  ;;  %v453_v61 = vsel %vm447_vm3, %v450_v49, %v452_v53 }
  0x26   : > { %v457_v62 = vsel %vm447_vm3, %v454_v51, %v456_v57  ;;  %v461_v63 = vsel %vm447_vm3, %v458_v52, %v460_v58  ;;  %v227_v2 = vshrl.u32 %v1064_v28, %v221_v45  ;;  %v229_v11 = vshll.u32 %v1064_v28, %v220_v21 }
  0x27   : > { %v1135_v5 = vmul.u32.u64.low %v1122_v20, %v461_v63  ;;  %v1136_v6 = vmul.u32.u64.high %v1122_v20, %v461_v63, %v1135_v5  ;;  %v1139_v7 = vmul.u32.u64.low %v1122_v20, %v457_v62  ;;  %v1140_v8 = vmul.u32.u64.high %v1122_v20, %v457_v62, %v1139_v7 }
  0x28   : > { %v225_v9 = vor.u32 %v224_v60, %v223_v48  ;;  %v228_v10 = vor.u32 %v227_v2, %v226_v56  ;;  %v230_v12 = vshrl.u32 %v1065_v30, %v221_v45  ;;  %v232_v13 = vshll.u32 %v1065_v30, %v220_v21 }
  0x29   : > { %v233_v14 = vshrl.u32 %v1066_v32, %v221_v45  ;;  %v235_v15 = vshll.u32 %v1066_v32, %v220_v21  ;;  %v236_v16 = vshrl.u32 %v1067_v40, %v221_v45  ;;  %v469_v17 = vmul.u32 %v1122_v20, %v453_v61 }
  0x2a   : > { %v231_v18 = vor.u32 %v230_v12, %v229_v11  ;;  %vm238_vm6 = vcmp.lt.s32.totalorder %v1126_v34, 1  ;;  %vm239_vm7 = vcmp.lt.s32.totalorder %v1126_v34, 2  ;;  %vm471_vm8 = vc.u32 %v1136_v6, %v1139_v7 }
  0x2b   : > { %v472_v19 = vadd.s32 1, %v1140_v8  ;;  %v234_v23 = vor.u32 %v233_v14, %v232_v13  ;;  %vm240_vm9 = vcmp.lt.s32.totalorder %v1126_v34, 3  ;;  %v237_v24 = vor.u32 %v236_v16, %v235_v15 }
  0x2c   : > { %vm241_vm10 = vcmp.lt.s32.totalorder %v1126_v34, 4  ;;  %v242_v25 = vsel %vm238_vm6, %v222_v59, %v225_v9  ;;  %v246_v21 = vsel %vm238_vm6, %v225_v9, %v228_v10  ;;  %v250_v28 = vsel %vm238_vm6, %v228_v10, %v231_v18 }
  0x2d   : > { %v473_v26 = vsel %vm471_vm8, %v472_v19, %v1140_v8  ;;  %v243_v20 = vsel %vm241_vm10, %v231_v18, 2102212464  ;;  %v247_v27 = vsel %vm241_vm10, %v234_v23, 920167782  ;;  %v251_v32 = vsel %vm241_vm10, %v237_v24, 1326507024 }
  0x2e   : > { %v474_v29 = vadd.s32 %v473_v26, %v469_v17  ;;  %v244_v30 = vsel %vm240_vm9, %v228_v10, %v243_v20  ;;  %v248_v31 = vsel %vm240_vm9, %v231_v18, %v247_v27  ;;  %v252_v36 = vsel %vm240_vm9, %v234_v23, %v251_v32 }
  0x2f   : > { %v245_v33 = vsel %vm239_vm7, %v242_v25, %v244_v30  ;;  %v249_v35 = vsel %vm239_vm7, %v246_v21, %v248_v31  ;;  %v253_v38 = vsel %vm239_vm7, %v250_v28, %v252_v36  ;;  %v470_v57 = vadd.s32 %v1139_v7, %v1136_v6 }
  0x30   : > { %v475_v37 = vadd.s32 536870912, %v474_v29  ;;  %v1157_v39 = vmul.u32.u64.low %v1124_v22, %v249_v35  ;;  %v1158_v40 = vmul.u32.u64.high %v1124_v22, %v249_v35, %v1157_v39  ;;  %v261_v44 = vmul.u32 %v1124_v22, %v245_v33 }
  0x31   : > { %v1161_v41 = vmul.u32.u64.low %v1124_v22, %v253_v38  ;;  %v1162_v42 = vmul.u32.u64.high %v1124_v22, %v253_v38, %v1161_v41  ;;  %vm506_vm8 = vweird.f32 %v1107_v0 }
  0x32   : > { %v476_v43 = vshrl.u32 %v475_v37, 30  ;;  %v264_v46 = vadd.s32 1, %v1158_v40 }
  0x33   : > { %vm263_vm11 = vc.u32 %v1162_v42, %v1157_v39  ;;  %v262_v13 = vadd.s32 %v1157_v39, %v1162_v42 }
  0x34   : > { %v477_v45 = vshll.u32 %v476_v43, 30  ;;  %v265_v34 = vsel %vm263_vm11, %v264_v46, %v1158_v40  ;;  %v500_v6 = vsub.s32 4, %v476_v43 }
  0x35   : > { %v266_v48 = vadd.s32 %v265_v34, %v261_v44 }
  0x36   : > { %v478_v47 = vsub.s32 %v474_v29, %v477_v45  ;;  %v501_v25 = vsel %vm416_vm14, %v500_v6, %v476_v43 }
  0x37   : > { %v267_v50 = vadd.s32 536870912, %v266_v48  ;;  %v503_v28 = vsel %vm415_vm15, 0, %v501_v25 }
  0x38   : > { %v480_v49 = vsub.s32 0, %v478_v47  ;;  %v610_v33 = vadd.s32 3, %v503_v28  ;;  %v507_v38 = vand.u32 3, %v503_v28 }
  0x39   : > { %v268_v52 = vshrl.u32 %v267_v50, 30 }
  0x3a   : > { %v1003_v51 = vmin.u32 %v480_v49, %v478_v47  ;;  %v611_v37 = vand.u32 3, %v610_v33  ;;  %vm512_vm3 = vcmp.eq.s32.totalorder %v507_v38, 2  ;;  %vm509_vm5 = vcmp.eq.s32.totalorder %v507_v38, 0 }
  0x3b   : > { %v269_v54 = vshll.u32 %v268_v52, 30  ;;  %v292_v32 = vsub.s32 4, %v268_v52  ;;  %vm508_vm7 = vcmp.lt.s32.totalorder %v507_v38, 2 }
  0x3c   : > { %v482_v53 = vclz %v1003_v51  ;;  %vm616_vm2 = vcmp.eq.s32.totalorder %v611_v37, 2  ;;  %vm613_vm4 = vcmp.eq.s32.totalorder %v611_v37, 0  ;;  %vm612_vm6 = vcmp.lt.s32.totalorder %v611_v37, 2 }
  0x3d   : > { %v270_v56 = vsub.s32 %v266_v48, %v269_v54  ;;  %v293_v36 = vsel %vm208_vm0, %v292_v32, %v268_v52 }
  0x3e   : > { %v1004_v55 = vadd.s32 4294967294, %v482_v53  ;;  %v295_v41 = vsel %vm207_vm1, 0, %v293_v36 }
  0x3f   : > { %v272_v58 = vsub.s32 0, %v270_v56  ;;  %v402_v45 = vadd.s32 3, %v295_v41  ;;  %v299_v52 = vand.u32 3, %v295_v41 }
  0x40   : > { %vm1005_vm12 = vcmp.lt.s32.totalorder %v1004_v55, 0 }
  0x41   : > { %v485_v22 = vsel %vm1005_vm12, 0, %v1004_v55  ;;  %v995_v62 = vmin.u32 %v272_v58, %v270_v56  ;;  %v403_v50 = vand.u32 3, %v402_v45  ;;  %vm304_vm10 = vcmp.eq.s32.totalorder %v299_v52, 2 }
  0x42   : > { %v486_v59 = vsub.s32 32, %v485_v22  ;;  %v487_v60 = vshll.u32 %v478_v47, %v485_v22  ;;  %v490_v61 = vsub.s32 4294967266, %v485_v22  ;;  %vm301_vm12 = vcmp.eq.s32.totalorder %v299_v52, 0 }
  0x43   : > { %v274_v5 = vclz %v995_v62  ;;  %vm408_vm9 = vcmp.eq.s32.totalorder %v403_v50, 2  ;;  %vm405_vm11 = vcmp.eq.s32.totalorder %v403_v50, 0 }
  0x44   : > { %v488_v63 = vshrl.u32 %v470_v57, %v486_v59  ;;  %v491_v2 = vadd.s32 127, %v490_v61  ;;  %v1069_v57 = vmov 0  }
  0x45   : > { %v996_v10 = vadd.s32 4294967294, %v274_v5  ;;  %1041 = vset.pattern.permute.xlu0 %v1069_v57 }
  0x46   : > { %v489_v8 = vor.u32 %v488_v63, %v487_v60  ;;  %v492_v9 = vshll.u32 %v491_v2, 23  ;;  %v1070_v2 = vmov 1  }
  0x47   : > { %vm997_vm13 = vcmp.lt.s32.totalorder %v996_v10, 0  ;;  %1042 = vset.pattern.permute.xlu1 %v1070_v2 }
  0x48   : > { %v493_v11 = vor.u32 4788187, %v492_v9  ;;  %v496_v12 = vcvt.s32.f32 %v489_v8  ;;  %v277_v7 = vsel %vm997_vm13, 0, %v996_v10  ;;  %vm404_vm13 = vcmp.lt.s32.totalorder %v403_v50, 2 }
  0x49   : > { %v278_v15 = vsub.s32 32, %v277_v7  ;;  %v279_v16 = vshll.u32 %v270_v56, %v277_v7  ;;  %v282_v17 = vsub.s32 4294967266, %v277_v7 }
  0x4a   : > { %v494_v14 = vand.u32 2147483647, %v493_v11 }
  0x4b   : > { %v280_v19 = vshrl.u32 %v262_v13, %v278_v15  ;;  %v283_v23 = vadd.s32 127, %v282_v17 }
  0x4c   : > { %v497_v18 = vmul.f32 %v496_v12, %v494_v14 }
  0x4d   : > { %v281_v21 = vor.u32 %v280_v19, %v279_v16  ;;  %v284_v26 = vshll.u32 %v283_v23, 23 }
  0x4e   : > { %v498_v24 = vxor.u32 2147483648, %v497_v18 }
  0x4f   : > { %v285_v29 = vor.u32 4788187, %v284_v26  ;;  %v288_v30 = vcvt.s32.f32 %v281_v21 }
  0x50   : > { %v499_v20 = vsel %vm416_vm14, %v498_v24, %v497_v18  ;;  %vm300_vm14 = vcmp.lt.s32.totalorder %v299_v52, 2 }
  0x51   : > { %v502_v27 = vsel %vm415_vm15, %v1107_v0, %v499_v20  ;;  %v286_v31 = vand.u32 2147483647, %v285_v29  ;;  %vm298_vm15 = vweird.f32 %v1114_v3 }
  0x52   : > { %1046 = vcosq.f32 %v502_v27 }
  0x53   : > { %1048 = vsinq.f32 %v502_v27  ;;  %v289_v35 = vmul.f32 %v288_v30, %v286_v31 }
  0x55   : > { %v290_v1 = vxor.u32 2147483648, %v289_v35 }
  0x57   : > { %v291_v39 = vsel %vm208_vm0, %v290_v1, %v289_v35  ;;  %vm718_vm0 = vcmask 1041409  }
  0x58   : > { %v294_v40 = vsel %vm207_vm1, %v1114_v3, %v291_v39  ;;  %vm721_vm1 = vcmask 1042434  }
  0x59   : > { %1050 = vcosq.f32 %v294_v40 }
  0x5a   : > { %1052 = vsinq.f32 %v294_v40 }
  0x5c   : > { %v1047_v42 = vpop.eup %1046 }
  0x5d   : > { %v1049_v43 = vpop.eup %1048  ;;  %v513_v44 = vxor.u32 2147483648, %v1047_v42 }
  0x5e   : > { %v510_v46 = vxor.u32 2147483648, %v1049_v43 }
  0x5f   : > { %v618_v4 = vsel %vm616_vm2, %v513_v44, %v1049_v43  ;;  %v514_v47 = vsel %vm512_vm3, %v513_v44, %v1049_v43  ;;  %vm724_vm2 = vcmask 1043459   ;;  %vm793_vm3 = vcmask 122880  }
  0x60   : > { %v615_v34 = vsel %vm613_vm4, %v1047_v42, %v510_v46  ;;  %v511_v48 = vsel %vm509_vm5, %v1047_v42, %v510_v46 }
  0x61   : > { %v619_v49 = vsel %vm612_vm6, %v615_v34, %v618_v4  ;;  %v515_v51 = vsel %vm508_vm7, %v511_v48, %v514_v47 }
  0x62   : > { %v1179_v53 = vsel %vm506_vm8, nan, %v619_v49  ;;  %v1182_v54 = vsel %vm506_vm8, nan, %v515_v51 }
  0x63   : > { %634 = vrot.lane.b32.xlu1 %v1179_v53, %s1068_s21  ;;  %v1051_v55 = vpop.eup %1050  ;;  %v653_v21 = vsub.f32 0.0, %v1182_v54  ;;  %v683_v31 = vsub.f32 0.0, %v1179_v53 }
  0x64   : > { %v1053_v56 = vpop.eup %1052  ;;  %v305_v0 = vxor.u32 2147483648, %v1051_v55 }
  0x65   : > { %v302_v22 = vxor.u32 2147483648, %v1053_v56 }
  0x66   : > { %v410_v58 = vsel %vm408_vm9, %v305_v0, %v1053_v56  ;;  %v306_v59 = vsel %vm304_vm10, %v305_v0, %v1053_v56 }
  0x67   : > { %639 = vrot.lane.b32.xlu1 %v1182_v54, %s1068_s21  ;;  %v407_v60 = vsel %vm405_vm11, %v1051_v55, %v302_v22  ;;  %v303_v61 = vsel %vm301_vm12, %v1051_v55, %v302_v22  ;;  %v701_v55 = vld [vmem:[%s1204_s26 + $0x5] sm:$0x1]  ;;  %v702_v22 = vld [vmem:[%s1204_s26 + $0x9] sm:$0x1] }
  0x68   : > { %v411_v62 = vsel %vm404_vm13, %v407_v60, %v410_v58  ;;  %v307_v63 = vsel %vm300_vm14, %v303_v61, %v306_v59  ;;  %v737_v58 = vrot.slane %v701_v55, 7  ;;  %v697_v59 = vld [vmem:[%s1204_s26 + $0x4] sm:$0x1]  ;;  %v700_v60 = vld [vmem:[%s1204_s26 + $0x1] sm:$0x1] }
  0x69   : > { %v412_v5 = vsel %vm298_vm15, nan, %v411_v62  ;;  %v308_v8 = vsel %vm298_vm15, nan, %v307_v63  ;;  %v703_v61 = vld [vmem:[%s1204_s26 + $0xd] sm:$0x1]  ;;  %v739_v62 = vrot.slane %v702_v22, 6 }
  0x6a   : > { %622 = vrot.lane.b32.xlu0 %v412_v5, %s1068_s21  ;;  %v670_v16 = vmul.f32 %v1179_v53, %v412_v5  ;;  %v645_v23 = vmul.f32 %v1182_v54, %v308_v8  ;;  %v654_v33 = vmul.f32 %v653_v21, %v412_v5  ;;  %v684_v40 = vmul.f32 %v683_v31, %v308_v8  ;;  %v698_v63 = vld [vmem:[%s1204_s26 + $0x8] sm:$0x1] }
  0x6b   : > { %v768_v21 = vlaneseq }
  0x6c   : > { %v671_v24 = vadd.f32 %v670_v16, %v645_v23 }
  0x6e   : > { %627 = vrot.lane.b32.xlu0 %v308_v8, %s1068_s21 }
  0xd5   : > { %v635_v9 = vpop.permute.xlu1 %634 }
  0xd6   : > { %v643_v10 = vmul.f32 %v635_v9, %v1182_v54  ;;  %v637_v6 = vmul.f32 %v635_v9, %v1179_v53  ;;  %v741_v9 = vrot.slane %v703_v61, 5 }
  0xd9   : > { %v640_v13 = vpop.permute.xlu1 %639 }
  0xda   : > { %v644_v7 = vmul.f32 %v640_v13, %v1182_v54  ;;  %v642_v17 = vmul.f32 %v640_v13, %v1179_v53 }
  0xdc   : > { %v623_v11 = vpop.permute.xlu0 %622 }
  0xdd   : > { %v625_v12 = vmul.f32 %v623_v11, %v412_v5  ;;  %v631_v3 = vmul.f32 %v623_v11, %v308_v8  ;;  %v651_v27 = vmul.f32 %v642_v17, %v623_v11  ;;  %v690_v36 = vmul.f32 %v644_v7, %v623_v11 }
  0xde   : > { %v720_v11 = vrot.slane %v698_v63, 6 }
  0xdf   : > { %660 = vrot.lane.b32.xlu0 %v625_v12, %s1071_s22  ;;  %v692_v14 = vmul.f32 %v643_v10, %v631_v3  ;;  %v646_v25 = vmul.f32 %v637_v6, %v625_v12  ;;  %v655_v35 = vmul.f32 %v637_v6, %v631_v3  ;;  %v685_v41 = vmul.f32 %v643_v10, %v625_v12 }
  0xe0   : > { %v628_v15 = vpop.permute.xlu0 %627 }
  0xe1   : > { %v630_v18 = vmul.f32 %v628_v15, %v412_v5  ;;  %v632_v19 = vmul.f32 %v628_v15, %v308_v8  ;;  %v693_v26 = vadd.f32 %v692_v14, %v670_v16  ;;  %v650_v30 = vmul.f32 %v637_v6, %v628_v15  ;;  %v705_v8 = vld [vmem:[%s1204_s26 + $0x6] sm:$0x1]  ;;  %v704_v6 = vld [vmem:[%s1204_s26 + $0x2] sm:$0x1] }
  0xe2   : > { %v647_v32 = vadd.f32 %v646_v25, %v645_v23  ;;  %v689_v39 = vmul.f32 %v643_v10, %v628_v15  ;;  %v656_v42 = vadd.f32 %v655_v35, %v654_v33  ;;  %v686_v46 = vadd.f32 %v685_v41, %v684_v40  ;;  %v699_v10 = vld [vmem:[%s1204_s26 + $0xc] sm:$0x1] }
  0xe3   : > { %665 = vrot.lane.b32.xlu1 %v630_v18, %s1071_s22  ;;  %673 = vrot.lane.b32.xlu0 %v631_v3, %s1071_s22  ;;  %v694_v20 = vmul.f32 %v644_v7, %v632_v19  ;;  %v648_v28 = vmul.f32 %v642_v17, %v630_v18  ;;  %v652_v1 = vsub.f32 %v650_v30, %v651_v27  ;;  %v717_v5 = vrot.slane %v697_v59, 7  ;;  %v706_v3 = vld [vmem:[%s1204_s26 + $0xa] sm:$0x1] }
  0xe4   : > { %v657_v38 = vmul.f32 %v642_v17, %v632_v19  ;;  %v691_v43 = vsub.f32 %v689_v39, %v690_v36  ;;  %v687_v44 = vmul.f32 %v644_v7, %v630_v18  ;;  %v755_v14 = vrot.slane %v705_v8, 7  ;;  %v707_v18 = vld [vmem:[%s1204_s26 + $0xe] sm:$0x1] }
  0xe5   : > { %v695_v29 = vadd.f32 %v694_v20, %v693_v26  ;;  %v649_v37 = vadd.f32 %v648_v28, %v647_v32  ;;  %v723_v7 = vrot.slane %v699_v10, 5  ;;  %v759_v20 = vrot.slane %v707_v18, 5 }
  0xe6   : > { %v658_v45 = vadd.f32 %v657_v38, %v656_v42  ;;  %v688_v4 = vadd.f32 %v687_v44, %v686_v46  ;;  %v756_v23 = vsel %vm718_vm0, %v755_v14, %v704_v6  ;;  %v769_v33 = vshrl.u32 %v768_v21, 7 }
  0xe7   : > { %678 = vrot.lane.b32.xlu1 %v632_v19, %s1071_s22  ;;  %806 = vperm.xlu0 %1041, %v671_v24   ;;  %v1072_v24 = vmov 1966171168  }
  0xe8   : > { %v766_v25 = vunpack.c.l.s4 %v1072_v24 }
  0xea   : > { %v767_v32 = vunpack.c.0.s8 %v766_v25 }
  0xeb   : > { %730 = vperm.xlu1 %1042, %v652_v1   ;;  %1043 = vset.pattern.permute.xlu0 %v1070_v2 }
  0xec   : > { %710 = vperm.xlu0 %1043, %v649_v37   ;;  %v770_v37 = vsub.s32 %v767_v32, %v769_v33 }
  0xef   : > { %859 = vperm.xlu1 %1042, %v691_v43  }
  0xf0   : > { %748 = vperm.xlu0 %1043, %v658_v45  }
  0xf3   : > { %853 = vperm.xlu1 %1042, %v688_v4  }
  0xf7   : > { %1044 = vset.pattern.permute.xlu1 %v1069_v57 }
 0x151   : > { %v661_v47 = vpop.permute.xlu0 %660 }
 0x152   : > { %v663_v48 = vmul.f32 %v661_v47, %v1182_v54 }
 0x155   : > { %v666_v34 = vpop.permute.xlu1 %665  ;;  %v674_v50 = vpop.permute.xlu0 %673 }
 0x156   : > { %v668_v49 = vmul.f32 %v666_v34, %v1179_v53  ;;  %v676_v56 = vmul.f32 %v674_v50, %v1182_v54  ;;  %v738_v54 = vsel %vm718_vm0, %v737_v58, %v700_v60 }
 0x157   : > { %v740_v12 = vsel %vm721_vm1, %v739_v62, %v738_v54 }
 0x158   : > { %v669_v51 = vsub.f32 %v663_v48, %v668_v49  ;;  %v742_v15 = vsel %vm724_vm2, %v741_v9, %v740_v12 }
 0x159   : > { %v679_v52 = vpop.permute.xlu1 %678 }
 0x15a   : > { %v681_v0 = vmul.f32 %v679_v52, %v1179_v53  ;;  %800 = vperm.xlu1 %1044, %v669_v51   ;;  %v696_v53 = vld [vmem:[%s1204_s26] sm:$0x1] }
 0x15b   : > { %v719_v13 = vsel %vm718_vm0, %v717_v5, %v696_v53 }
 0x15c   : > { %v682_v57 = vsub.f32 %v676_v56, %v681_v0  ;;  %v722_v17 = vsel %vm721_vm1, %v720_v11, %v719_v13 }
 0x15d   : > { %v725_v26 = vsel %vm724_vm2, %v723_v7, %v722_v17 }
 0x15e   : > { %813 = vperm.xlu1 %1044, %v682_v57  }
 0x162   : > { %1045 = vset.pattern.permute.xlu1 %v1070_v2  ;;  %v757_v2 = vrot.slane %v706_v3, 6 }
 0x163   : > { %866 = vperm.xlu1 %1045, %v695_v29  }
 0x164   : > { %v758_v28 = vsel %vm721_vm1, %v757_v2, %v756_v23 }
 0x165   : > { %v760_v35 = vsel %vm724_vm2, %v759_v20, %v758_v28 }
 0x166   : > { %v807_v16 = vpop.permute.xlu0 %806 }
 0x167   : > { %v809_v19 = vmul.f32 %v807_v16, %v742_v15 }
 0x16a   : > { %v731_v27 = vpop.permute.xlu1 %730 }
 0x16b   : > { %v711_v29 = vpop.permute.xlu0 %710  ;;  %v744_v30 = vmul.f32 %v742_v15, %v731_v27 }
 0x16c   : > { %v727_v31 = vmul.f32 %v725_v26, %v711_v29 }
 0x16e   : > { %v745_v36 = vadd.f32 %v744_v30, %v727_v31  ;;  %v860_v46 = vpop.permute.xlu1 %859 }
 0x16f   : > { %v749_v1 = vpop.permute.xlu0 %748  ;;  %v862_v55 = vmul.f32 %v860_v46, %v742_v15 }
 0x170   : > { %v762_v38 = vmul.f32 %v760_v35, %v749_v1 }
 0x172   : > { %v763_v39 = vadd.f32 %v762_v38, %v745_v36  ;;  %v854_v4 = vpop.permute.xlu1 %853 }
 0x173   : > { %v856_v51 = vmul.f32 %v854_v4, %v725_v26 }
 0x174   : > { %v771_v40 = vrot.slane %v763_v39, %v770_v37 }
 0x175   : > { %v863_v57 = vadd.f32 %v862_v55, %v856_v51 }
 0x176   : > { %v772_v41 = vcombine.high %v771_v40, %v771_v40  ;;  %v779_v42 = vrot.slane %v771_v40, %v770_v37 }
 0x178   : > { %v786_v43 = vrot.slane %v772_v41, %v770_v37  ;;  %v787_v44 = vcombine.high %v779_v42, %v779_v42  ;;  %794 = vst.msk [vmem:[%s1237_s29] sm:$0x1] %vm793_vm3, %v779_v42 }
 0x17a   : > { %v788_v45 = vcombine.high %v786_v43, %v786_v43  ;;  %795 = vst.msk [vmem:[%s1237_s29 + $0x4] sm:$0x1] %vm793_vm3, %v786_v43  ;;  %796 = vst.msk [vmem:[%s1237_s29 + $0x8] sm:$0x1] %vm793_vm3, %v787_v44 }
 0x17c   : > { %797 = vst.msk [vmem:[%s1237_s29 + $0xc] sm:$0x1] %vm793_vm3, %v788_v45 }
 0x1d9   : > { %v801_v47 = vpop.permute.xlu1 %800 }
 0x1da   : > { %v803_v34 = vmul.f32 %v801_v47, %v725_v26 }
 0x1dc   : > { %v810_v49 = vadd.f32 %v809_v19, %v803_v34 }
 0x1dd   : > { %v814_v48 = vpop.permute.xlu1 %813 }
 0x1de   : > { %v816_v50 = vmul.f32 %v814_v48, %v760_v35 }
 0x1e0   : > { %v817_v52 = vadd.f32 %v816_v50, %v810_v49 }
 0x1e2   : > { %v825_v56 = vrot.slane %v817_v52, %v770_v37  ;;  %v867_v0 = vpop.permute.xlu1 %866 }
 0x1e3   : > { %v869_v22 = vmul.f32 %v867_v0, %v760_v35 }
 0x1e4   : > { %v826_v58 = vcombine.high %v825_v56, %v825_v56  ;;  %v833_v59 = vrot.slane %v825_v56, %v770_v37 }
 0x1e5   : > { %v870_v60 = vadd.f32 %v869_v22, %v863_v57 }
 0x1e6   : > { %v840_v61 = vrot.slane %v826_v58, %v770_v37  ;;  %v841_v62 = vcombine.high %v833_v59, %v833_v59  ;;  %847 = vst.msk [vmem:[%s1237_s29 + $0x1] sm:$0x1] %vm793_vm3, %v833_v59 }
 0x1e7   : > { %v878_v63 = vrot.slane %v870_v60, %v770_v37 }
 0x1e8   : > { %v842_v5 = vcombine.high %v840_v61, %v840_v61  ;;  %848 = vst.msk [vmem:[%s1237_s29 + $0x5] sm:$0x1] %vm793_vm3, %v840_v61  ;;  %849 = vst.msk [vmem:[%s1237_s29 + $0x9] sm:$0x1] %vm793_vm3, %v841_v62 }
 0x1e9   : > { %v879_v54 = vcombine.high %v878_v63, %v878_v63  ;;  %v886_v53 = vrot.slane %v878_v63, %v770_v37 }
 0x1ea   : > { %850 = vst.msk [vmem:[%s1237_s29 + $0xd] sm:$0x1] %vm793_vm3, %v842_v5 }
 0x1eb   : > { %v893_v8 = vrot.slane %v879_v54, %v770_v37  ;;  %v894_v9 = vcombine.high %v886_v53, %v886_v53  ;;  %900 = vst.msk [vmem:[%s1237_s29 + $0x2] sm:$0x1] %vm793_vm3, %v886_v53 }
 0x1ed   : > { %v895_v10 = vcombine.high %v893_v8, %v893_v8  ;;  %901 = vst.msk [vmem:[%s1237_s29 + $0x6] sm:$0x1] %vm793_vm3, %v893_v8  ;;  %902 = vst.msk [vmem:[%s1237_s29 + $0xa] sm:$0x1] %vm793_vm3, %v894_v9 }
 0x1ef   : > { %903 = vst.msk [vmem:[%s1237_s29 + $0xe] sm:$0x1] %vm793_vm3, %v895_v10 }
 0x1f0 PF: > { %s13_s12 = sadd.s32 1, %s1060_s12  }
 0x1f1   : > { %p10_p4 = scmp.ge.s32.totalorder %s13_s12, 4  }
 0x1f3   :  { %12 = sbr.rel (!%p10_p4) target bundleno = 1 (0x1), region = 68 }

</bundles_post_ra>
